<compile_context>
chip_gen: v6e
topology: v6e:2x2x1
jax: 0.10.0
libtpu: 0.0.40
codegen_flags: <defaults>
</compile_context>

<pallas_src>
import functools

import jax
import jax.numpy as jnp
from jax import lax
from jax.experimental import pallas as pl
from jax.experimental.pallas import tpu as pltpu

EPS = 1e-5  # nn.LayerNorm default


def _add_norm_kernel(x1_ref, x2_ref, gamma_ref, beta_ref, o_ref, *, hidden):
    # "Add": for sub-32-bit inputs do the sum in the native (packed) dtype —
    # matches PyTorch semantics (x1+x2 is bf16) and halves VALU issue for this
    # op on v6e/v7x.  f32 inputs add directly in f32 (astype is a no-op).
    x_nat = x1_ref[...] + x2_ref[...]                 # (TM, H), input dtype
    x = x_nat.astype(jnp.float32)                     # single upcast for stats

    # "Norm": LayerNorm over the last axis, biased variance, eps = 1e-5.
    # Single-pass sums scaled once by 1/H (one XLU reduce pass each, no full
    # (TM,H) centering subtraction before the variance).
    inv_h = jnp.float32(1.0 / hidden)
    s = jnp.sum(x, axis=-1, keepdims=True)            # (TM, 1)
    ss = jnp.sum(x * x, axis=-1, keepdims=True)       # (TM, 1)
    mean = s * inv_h
    var = ss * inv_h - mean * mean                    # biased variance
    var = jnp.maximum(var, 0.0)                       # guard against rounding < 0
    inv = lax.rsqrt(var + EPS)                        # EUP slot — effectively free

    g = gamma_ref[...].astype(jnp.float32)            # (1, H) broadcast
    b = beta_ref[...].astype(jnp.float32)
    y = (x - mean) * inv * g + b
    o_ref[...] = y.astype(o_ref.dtype)


def _tpu_generation_params():
    """Per-generation (target_tile_bytes, min_grid_steps, vmem_limit_bytes).

    v7x-class chips are identified by their smaller (<=64 MiB/TC) VMEM; they
    have ~2.3x the HBM bandwidth of v6e so they want larger tiles to keep the
    per-step overhead amortized, but must leave VMEM headroom for Mosaic
    scratch.  Unknown / query-failure falls back to conservative settings that
    are safe on every generation.
    """
    vmem_cap = None
    try:
        info = pltpu.get_tpu_info()
        vmem_cap = getattr(info, "vmem_capacity_bytes", None)
    except Exception:
        vmem_cap = None

    if vmem_cap is not None and vmem_cap <= 64 * 1024 * 1024:
        # v7x-class: 64 MiB/TC VMEM, ~3.2 TB/s HBM, 2 TCs/chip.
        limit = min(48 * 1024 * 1024, vmem_cap - 16 * 1024 * 1024)
        return 4 * 1024 * 1024, 8, limit
    if vmem_cap is not None:
        # v5e/v6e-class: 128 MiB VMEM, <=1.4 TB/s HBM.
        return 2 * 1024 * 1024, 4, 64 * 1024 * 1024
    # Unknown generation: conservative everywhere.
    return 2 * 1024 * 1024, 4, 48 * 1024 * 1024


def _pick_row_tile(rows, hidden, itemsize, *, target_bytes, min_steps):
    """Pick a row-tile TM.

    VMEM footprint ≈ (2 inputs + 1 output) × 2 buffers × tile
                     + ~2 × f32-tile temporaries (the (TM,H) f32 add result and
                       its square are reused after the reductions, so they are
                       VMEM temps — 2× the bf16 tile size for bf16 I/O)
                     + gamma/beta (negligible).
    With target_bytes = 2 MiB that's ~16-20 MiB; with 4 MiB (v7x) ~32-40 MiB —
    both within the per-generation vmem limits chosen above.

    Constraints applied, in order:
      * sublane alignment (8 rows for 32-bit, 16 for 16-bit packed dtypes),
      * at least `min_steps` grid iterations when rows allow (keeps the
        double-buffered pipeline alive and both v7x TCs busy),
      * prefer a TM that divides rows exactly (no ragged tail / masked stores).
    """
    align = 8 if itemsize >= 4 else 16

    tm = max(align, (target_bytes // max(1, hidden * itemsize)) // align * align)

    if rows >= min_steps * align:
        tm = min(tm, max(align, (rows // min_steps) // align * align))

    if tm >= rows:
        # Whole array in one block (block_shape == array dims is always legal,
        # even when rows/H are not multiples of 8/128 — the toy-shape case).
        return rows

    # Round down to an aligned divisor of rows so every grid step is identical.
    t = tm
    while t >= align:
        if rows % t == 0:
            return t
        t -= align
    return tm  # ragged-tail fallback: still correct, just a masked last step


def add_and_norm(x1, x2, gamma, beta):
    """x1, x2: (B, S, H); gamma, beta: (H,). Returns LayerNorm(x1 + x2)."""
    assert x1.shape == x2.shape
    B, S, H = x1.shape
    rows = B * S
    # Production shapes should keep H a multiple of 128 (lane-dense stores);
    # smaller H still works but hits masked partial stores.

    x1f = x1.reshape(rows, H)
    x2f = x2.reshape(rows, H)
    g2 = gamma.reshape(1, H)
    b2 = beta.reshape(1, H)

    target_bytes, min_steps, vmem_limit = _tpu_generation_params()
    tm = _pick_row_tile(rows, H, x1.dtype.itemsize,
                        target_bytes=target_bytes, min_steps=min_steps)
    grid = (pl.cdiv(rows, tm),)

    # Row tiles stream through the grid (double-buffered by Pallas).
    row_spec = pl.BlockSpec((tm, H), lambda i: (i, 0))
    # gamma/beta map to the same block every step -> resident in VMEM.
    param_spec = pl.BlockSpec((1, H), lambda i: (0, 0))

    kernel = functools.partial(_add_norm_kernel, hidden=H)

    out = pl.pallas_call(
        kernel,
        out_shape=jax.ShapeDtypeStruct((rows, H), x1.dtype),
        grid_spec=pltpu.PrefetchScalarGridSpec(
            num_scalar_prefetch=0,
            grid=grid,
            in_specs=[row_spec, row_spec, param_spec, param_spec],
            out_specs=row_spec,
        ),
        compiler_params=pltpu.CompilerParams(
            # Row tiles are independent: shards across both TCs on v7x,
            # harmless (single TC) on v5e/v6e.
            dimension_semantics=("parallel",),
            vmem_limit_bytes=vmem_limit,
        ),
    )(x1f, x2f, g2, b2)

    return out.reshape(B, S, H)


def _reference(x1, x2, gamma, beta):
    x = (x1 + x2).astype(jnp.float32)
    mean = jnp.mean(x, axis=-1, keepdims=True)
    var = jnp.mean((x - mean) ** 2, axis=-1, keepdims=True)
    y = (x - mean) * lax.rsqrt(var + EPS) * gamma.astype(jnp.float32) \
        + beta.astype(jnp.float32)
    return y.astype(x1.dtype)


if __name__ == "__main__":
    key = jax.random.PRNGKey(0)

    # --- Toy f32 case (module-scale shapes: batch=2, seq=8, hidden=32) ------
    B, S, H = 2, 8, 32
    k1, k2 = jax.random.split(key)
    x1 = jax.random.normal(k1, (B, S, H), dtype=jnp.float32)
    x2 = jax.random.normal(k2, (B, S, H), dtype=jnp.float32)
    # nn.LayerNorm init: weight = ones, bias = zeros (deterministic).
    gamma = jnp.ones((H,), dtype=jnp.float32)
    beta = jnp.zeros((H,), dtype=jnp.float32)

    y = add_and_norm(x1, x2, gamma, beta)
    jax.block_until_ready(y)
    y_ref = _reference(x1, x2, gamma, beta)
    assert y.shape == (B, S, H)
    assert jnp.allclose(y, y_ref, atol=1e-5, rtol=1e-5)

    # --- bf16 case with production-like, lane-dense H (multiple of 128) -----
    Bb, Sb, Hb = 4, 64, 256
    k3, k4, k5, k6 = jax.random.split(key, 4)
    x1b = jax.random.normal(k3, (Bb, Sb, Hb), dtype=jnp.bfloat16)
    x2b = jax.random.normal(k4, (Bb, Sb, Hb), dtype=jnp.bfloat16)
    gammab = (1.0 + 0.1 * jax.random.normal(k5, (Hb,))).astype(jnp.bfloat16)
    betab = (0.1 * jax.random.normal(k6, (Hb,))).astype(jnp.bfloat16)

    yb = add_and_norm(x1b, x2b, gammab, betab)
    jax.block_until_ready(yb)
    yb_ref = _reference(x1b, x2b, gammab, betab)
    assert yb.shape == (Bb, Sb, Hb)
    assert jnp.allclose(yb.astype(jnp.float32), yb_ref.astype(jnp.float32),
                        atol=3e-2, rtol=3e-2)

    print("KERNEL_OK")
</pallas_src>

<mosaic_0001>
module attributes {stable_mosaic.version = 11 : i64} {
  func.func @_add_norm_kernel(%arg0: i32, %arg1: memref<16x32xf32, #tpu.memory_space<vmem>>, %arg2: memref<16x32xf32, #tpu.memory_space<vmem>>, %arg3: memref<1x32xf32, #tpu.memory_space<vmem>>, %arg4: memref<1x32xf32, #tpu.memory_space<vmem>>, %arg5: memref<16x32xf32, #tpu.memory_space<vmem>>) attributes {dimension_semantics = [#tpu.dimension_semantics<parallel>], iteration_bounds = array<i64: 1>, scalar_prefetch = 0 : i64, scratch_operands = 0 : i64, tpu.core_type = #tpu.core_type<tc>, window_params = [{transform_indices = @transform_0, window_bounds = array<i64: 16, 32>}, {transform_indices = @transform_1, window_bounds = array<i64: 16, 32>}, {pipeline_mode = #tpu.pipeline_mode<synchronous>, transform_indices = @transform_2, window_bounds = array<i64: 1, 32>}, {pipeline_mode = #tpu.pipeline_mode<synchronous>, transform_indices = @transform_3, window_bounds = array<i64: 1, 32>}, {transform_indices = @transform_4, window_bounds = array<i64: 16, 32>}]} {
    %c0 = arith.constant 0 : index
    %c0_0 = arith.constant 0 : index
    %0 = vector.load %arg1[%c0, %c0_0] : memref<16x32xf32, #tpu.memory_space<vmem>>, vector<16x32xf32>
    %c0_1 = arith.constant 0 : index
    %c0_2 = arith.constant 0 : index
    %1 = vector.load %arg2[%c0_1, %c0_2] : memref<16x32xf32, #tpu.memory_space<vmem>>, vector<16x32xf32>
    %2 = arith.addf %0, %1 : vector<16x32xf32>
    %cst = arith.constant dense<0.000000e+00> : vector<16xf32>
    %3 = vector.multi_reduction <add>, %2, %cst [1] : vector<16x32xf32> to vector<16xf32>
    %4 = vector.shape_cast %3 : vector<16xf32> to vector<16x1xf32>
    %5 = arith.mulf %2, %2 : vector<16x32xf32>
    %cst_3 = arith.constant dense<0.000000e+00> : vector<16xf32>
    %6 = vector.multi_reduction <add>, %5, %cst_3 [1] : vector<16x32xf32> to vector<16xf32>
    %7 = vector.shape_cast %6 : vector<16xf32> to vector<16x1xf32>
    %cst_4 = arith.constant 3.125000e-02 : f32
    %8 = vector.broadcast %cst_4 : f32 to vector<16x1xf32>
    %9 = arith.mulf %4, %8 : vector<16x1xf32>
    %cst_5 = arith.constant 3.125000e-02 : f32
    %10 = vector.broadcast %cst_5 : f32 to vector<16x1xf32>
    %11 = arith.mulf %7, %10 : vector<16x1xf32>
    %12 = arith.mulf %9, %9 : vector<16x1xf32>
    %13 = arith.subf %11, %12 : vector<16x1xf32>
    %cst_6 = arith.constant 0.000000e+00 : f32
    %14 = vector.broadcast %cst_6 : f32 to vector<16x1xf32>
    %15 = arith.maximumf %13, %14 : vector<16x1xf32>
    %cst_7 = arith.constant 9.99999974E-6 : f32
    %16 = vector.broadcast %cst_7 : f32 to vector<16x1xf32>
    %17 = arith.addf %15, %16 : vector<16x1xf32>
    %18 = math.rsqrt %17 : vector<16x1xf32>
    %c0_8 = arith.constant 0 : index
    %c0_9 = arith.constant 0 : index
    %19 = vector.load %arg3[%c0_8, %c0_9] : memref<1x32xf32, #tpu.memory_space<vmem>>, vector<1x32xf32>
    %c0_10 = arith.constant 0 : index
    %c0_11 = arith.constant 0 : index
    %20 = vector.load %arg4[%c0_10, %c0_11] : memref<1x32xf32, #tpu.memory_space<vmem>>, vector<1x32xf32>
    %21 = vector.broadcast %9 : vector<16x1xf32> to vector<16x32xf32>
    %22 = arith.subf %2, %21 : vector<16x32xf32>
    %23 = vector.broadcast %18 : vector<16x1xf32> to vector<16x32xf32>
    %24 = arith.mulf %22, %23 : vector<16x32xf32>
    %25 = vector.broadcast %19 : vector<1x32xf32> to vector<16x32xf32>
    %26 = arith.mulf %24, %25 : vector<16x32xf32>
    %27 = vector.broadcast %20 : vector<1x32xf32> to vector<16x32xf32>
    %28 = arith.addf %26, %27 : vector<16x32xf32>
    %c0_12 = arith.constant 0 : index
    %c0_13 = arith.constant 0 : index
    %29 = vector.load %arg5[%c0_12, %c0_13] : memref<16x32xf32, #tpu.memory_space<vmem>>, vector<16x32xf32>
    tpu.vector_store %arg5[%c0_12, %c0_13], %28 {strides = array<i32>} : memref<16x32xf32, #tpu.memory_space<vmem>>, vector<16x32xf32>,
    return
  }
  func.func @transform_0(%arg0: i32) -> (i32, i32) {
    %c0_i32 = arith.constant 0 : i32
    %c0_i32_0 = arith.constant 0 : i32
    return %arg0, %c0_i32 : i32, i32
  }
  func.func @transform_1(%arg0: i32) -> (i32, i32) {
    %c0_i32 = arith.constant 0 : i32
    %c0_i32_0 = arith.constant 0 : i32
    return %arg0, %c0_i32 : i32, i32
  }
  func.func @transform_2(%arg0: i32) -> (i32, i32) {
    %c0_i32 = arith.constant 0 : i32
    %c0_i32_0 = arith.constant 0 : i32
    %c0_i32_1 = arith.constant 0 : i32
    return %c0_i32, %c0_i32_0 : i32, i32
  }
  func.func @transform_3(%arg0: i32) -> (i32, i32) {
    %c0_i32 = arith.constant 0 : i32
    %c0_i32_0 = arith.constant 0 : i32
    %c0_i32_1 = arith.constant 0 : i32
    return %c0_i32, %c0_i32_0 : i32, i32
  }
  func.func @transform_4(%arg0: i32) -> (i32, i32) {
    %c0_i32 = arith.constant 0 : i32
    %c0_i32_0 = arith.constant 0 : i32
    return %arg0, %c0_i32 : i32, i32
  }
}

</mosaic_0001>

<bundles_post_ra>
// kernel: tpu_custom_call.1
= control target key start
LH: loop header
LB: loop body
LE: loop exit
PB: predicated region body
PF: predicated region fallthrough
CT: control target
= control target key end

     0   :  { %9 = vsyncpa [#allocation3], 0  ;;  %s260_s0 = inlined_call_operand.hbm [shape: f32[16,32], index: 0, kind: input, shape index: {}]   ;;  %s261_s1 = inlined_call_operand.hbm [shape: f32[16,32], index: 1, kind: input, shape index: {}]   ;;  %s262_s2 = inlined_call_operand.vmem [shape: f32[1,32], index: 2, kind: input, shape index: {}]   ;;  %s263_s3 = inlined_call_operand.vmem [shape: f32[1,32], index: 3, kind: input, shape index: {}]   ;;  %s264_s4 = inlined_call_operand.hbm [shape: f32[16,32], index: 4, kind: output, shape index: {}]  }
   0x1   :  { %10 = vsyncpa [#allocation6], 0 }
   0x2   :  { %11 = vsyncpa [#allocation4], 0  ;;  %s200_s15 = smov [#allocation2]  }
   0x3   :  { %s17_s16 = sshll.u32 %s200_s15, 4  ;;  %s18_s16 = int_to_ptr.vmem [resolvable:$true] %s17_s16 }
   0x4   :  { %s142_s17 = scalar_lea.vmem %s18_s16, 256  ;;  %p147_p1 = scmp.lt.s32.totalorder %s18_s16, %s18_s16 }
   0x5   :  { %p143_p0 = scmp.ne.s32.totalorder %s18_s16, %s142_s17  ;;  %p148_p2 = scmp.lt.s32.totalorder %s142_s17, %s142_s17 }
   0x7   :  { %p149_p3 = por %p148_p2, %p147_p1 }
   0x9   :  { %p150_p4 = pnand %p149_p3, %p143_p0 }
   0xb   :  { %153 = shalt.err (!%p150_p4)
}
   0xc   :  { %s201_s18 = smov 128   ;;  %s202_s19 = smov 8  }
   0xd   :  { %23 = dma.hbm_to_vmem [thread:$0]  %s260_s0, 256, %s18_s16, [#allocation3], %s201_s18, %s201_s18, %s202_s19  }
   0xe   :  { %s203_s22 = smov [#allocation5]  }
   0xf   :  { %s29_s23 = sshll.u32 %s203_s22, 4  ;;  %s30_s23 = int_to_ptr.vmem [resolvable:$true] %s29_s23 }
  0x10   :  { %s162_s24 = scalar_lea.vmem %s30_s23, 256  ;;  %p167_p6 = scmp.lt.s32.totalorder %s30_s23, %s30_s23 }
  0x11   :  { %p163_p5 = scmp.ne.s32.totalorder %s30_s23, %s162_s24  ;;  %p168_p7 = scmp.lt.s32.totalorder %s162_s24, %s162_s24 }
  0x13   :  { %p169_p8 = por %p168_p7, %p167_p6 }
  0x15   :  { %p170_p9 = pnand %p169_p8, %p163_p5 }
  0x17   :  { %173 = shalt.err (!%p170_p9)
}
  0x18   :  { %35 = dma.hbm_to_vmem [thread:$0]  %s261_s1, 256, %s30_s23, [#allocation6], %s201_s18, %s201_s18, %s202_s19  }
  0x19   :  { %194 = dma.done.wait [#allocation3], 256  }
  0x1a   :  { %195 = vsyncadd [#allocation3], 4294967040 }
  0x1b   :  { %196 = dma.done.wait [#allocation6], 256  }
  0x1c   :  { %197 = vsyncadd [#allocation6], 4294967040  ;;  %v46_v0 = vld [vmem:[#allocation2] sm:$0xff]  ;;  %v48_v1 = vld [vmem:[#allocation5] sm:$0xff]  ;;  %vm52_vm0 = vcmask 261120   ;;  %s204_s29 = smov [#allocation7]  }
  0x1d   :  { %v47_v2 = vld [vmem:[#allocation2 + $0x8] sm:$0xff]  ;;  %v50_v3 = vadd.f32 %v48_v1, %v46_v0  ;;  %v49_v4 = vld [vmem:[#allocation5 + $0x8] sm:$0xff]  ;;  %v123_v30 = vld [vmem:[%s262_s2] ss:$0 sm:$0xff]  ;;  %s110_s30 = sshll.u32 %s204_s29, 4  ;;  %s111_s30 = int_to_ptr.vmem [resolvable:$true] %s110_s30 }
  0x1e   :  { %v51_v5 = vadd.f32 %v49_v4, %v47_v2  ;;  %v124_v32 = vld [vmem:[%s263_s3] ss:$0 sm:$0xff]  ;;  %s174_s2 = scalar_lea.vmem %s111_s30, 256  ;;  %p179_p11 = scmp.lt.s32.totalorder %s111_s30, %s111_s30 }
  0x1f   :  { %v53_v6 = vsel %vm52_vm0, %v50_v3, 0.0  ;;  %v59_v7 = vmul.f32 %v50_v3, %v50_v3  ;;  %p175_p10 = scmp.ne.s32.totalorder %s111_s30, %s174_s2  ;;  %p180_p12 = scmp.lt.s32.totalorder %s174_s2, %s174_s2 }
  0x20   :  { %54 = vadd.xlane.f32.xlu0 %v53_v6  ;;  %v60_v8 = vmul.f32 %v51_v5, %v51_v5  ;;  %v56_v10 = vsel %vm52_vm0, %v51_v5, 0.0 }
  0x21   :  { %v61_v9 = vsel %vm52_vm0, %v59_v7, 0.0  ;;  %p181_p13 = por %p180_p12, %p179_p11 }
  0x22   :  { %62 = vadd.xlane.f32.xlu1 %v61_v9  ;;  %v64_v11 = vsel %vm52_vm0, %v60_v8, 0.0 }
  0x23   :  { %p182_p0 = pnand %p181_p13, %p175_p10 }
  0x24   :  { %57 = vadd.xlane.f32.xlu0 %v56_v10 }
  0x26   :  { %65 = vadd.xlane.f32.xlu1 %v64_v11 }
  0xa9   :  { %v55_v12 = vpop.xlane.xlu0 %54 }
  0xaa   :  { %v67_v13 = vmul.f32 0.03125, %v55_v12 }
  0xab   :  { %v63_v14 = vpop.xlane.xlu1 %62 }
  0xac   :  { %v71_v15 = vmul.f32 %v67_v13, %v67_v13  ;;  %v69_v16 = vmul.f32 0.03125, %v63_v14  ;;  %v83_v28 = vsub.f32 %v50_v3, %v67_v13 }
  0xad   :  { %v58_v17 = vpop.xlane.xlu0 %57 }
  0xae   :  { %v73_v18 = vsub.f32 %v69_v16, %v71_v15  ;;  %v68_v19 = vmul.f32 0.03125, %v58_v17 }
  0xaf   :  { %v66_v20 = vpop.xlane.xlu1 %65 }
  0xb0   :  { %v75_v21 = vmax.f32 %v73_v18, 0.0  ;;  %v72_v22 = vmul.f32 %v68_v19, %v68_v19  ;;  %v70_v23 = vmul.f32 0.03125, %v66_v20  ;;  %v84_v33 = vsub.f32 %v51_v5, %v68_v19 }
  0xb2   :  { %v77_v24 = vadd.f32 1e-05, %v75_v21  ;;  %v74_v25 = vsub.f32 %v70_v23, %v72_v22 }
  0xb4   :  { %130 = vrsqrt.f32 %v77_v24  ;;  %v76_v26 = vmax.f32 %v74_v25, 0.0 }
  0xb6   :  { %v78_v27 = vadd.f32 1e-05, %v76_v26 }
  0xb8   :  { %132 = vrsqrt.f32 %v78_v27 }
  0xc1   :  { %v131_v29 = vpop.eup %130 }
  0xc2   :  { %v85_v31 = vmul.f32 %v131_v29, %v83_v28 }
  0xc4   :  { %v93_v34 = vmul.f32 %v123_v30, %v85_v31 }
  0xc5   :  { %v133_v35 = vpop.eup %132 }
  0xc6   :  { %v86_v36 = vmul.f32 %v133_v35, %v84_v33  ;;  %v101_v37 = vadd.f32 %v124_v32, %v93_v34 }
  0xc8   :  { %v94_v38 = vmul.f32 %v123_v30, %v86_v36  ;;  %103 = vst.msk [vmem:[#allocation7] sm:$0xff] %vm52_vm0, %v101_v37 }
  0xca   :  { %v102_v39 = vadd.f32 %v124_v32, %v94_v38 }
  0xcc   :  { %104 = vst.msk [vmem:[#allocation7 + $0x8] sm:$0xff] %vm52_vm0, %v102_v39 }
  0xcd   :  { %185 = shalt.err (!%p182_p0)
}
  0xce   :  { %116 = dma.vmem_to_hbm [thread:$0]  %s111_s30, 256, %s264_s4, [#allocation4], %s201_s18, %s201_s18, %s202_s19  }
  0xcf   :  { %198 = dma.done.wait [#allocation4], 256  }
  0xd0   :  { %199 = vsyncadd [#allocation4], 4294967040 }
  0xd1   :  { %120 = vsyncpa [#allocation3], 1 }
  0xd2   :  { %121 = vsyncpa [#allocation6], 1 }
  0xd3   :  { %122 = vsyncpa [#allocation4], 1 }

</bundles_post_ra>
